<compile_context>
chip_gen: v5e
topology: v5e:2x2
jax: 0.10.0
libtpu: 0.0.40
codegen_flags: <defaults>
</compile_context>

<pallas_src>
import functools

import numpy as np
import jax
import jax.numpy as jnp
from jax.experimental import pallas as pl
from jax.experimental.pallas import tpu as pltpu


def _round_up(n, m):
    return ((n + m - 1) // m) * m


def _cdiv(a, b):
    return -(-a // b)


def _policy_kernel(xt_ref, w1_ref, b1_ref, wh_ref, bh_ref, out_ref, *, action_dim):
    # h^T = relu(W1 @ x^T + b1) : [H, S] @ [S, Tb] -> [H, Tb]; bf16 MXU operands,
    # f32 accumulate, f32 bias/activation (lane-broadcast of the [H, 1] bias).
    h = jnp.dot(w1_ref[...], xt_ref[...],
                preferred_element_type=jnp.float32) + b1_ref[...]
    h = jnp.maximum(h, 0.0)

    # Fused mu/std head: heads^T = W_heads @ h^T + b : [2A, H] @ [H, Tb] -> [2A, Tb]
    heads = jnp.dot(wh_ref[...], h.astype(jnp.bfloat16),
                    preferred_element_type=jnp.float32) + bh_ref[...]

    # Apply both activations over the tiny [2A, Tb] slab and select by row
    # (sublane) index; avoids narrow sublane slicing/concat inside the kernel.
    mu_all = (jnp.tanh(heads) + 1.0) * np.pi
    std_all = jnp.logaddexp(heads, 0.0) + 0.001            # softplus + 0.001
    row = jax.lax.broadcasted_iota(jnp.int32, heads.shape, dimension=0)
    out_ref[...] = jnp.where(row < action_dim, mu_all, std_all).astype(out_ref.dtype)


def policy_net_continuous(x, params, action_dim, *, batch_tile=4096):
    """x: [B, state_dim] float32.  Returns (mu, std), each [B, action_dim] f32."""
    B, state_dim = x.shape
    hidden, s_in = params["w1"].shape
    assert s_in == state_dim
    two_a = params["w_heads"].shape[0]
    assert two_a == 2 * action_dim

    # Lane-dense batch tiling: tile is always a multiple of 128 (lane axis),
    # tiles are balanced to minimize tail padding, and we force >=2 grid steps
    # whenever the padded batch allows it (keeps both v7x TensorCores busy).
    b128 = _round_up(max(B, 1), 128)
    n_tiles = max(_cdiv(b128, max(int(batch_tile), 128)), 1)
    if b128 >= 256:
        n_tiles = max(n_tiles, 2)
    tile_b = _round_up(_cdiv(b128, n_tiles), 128)
    n_tiles = _cdiv(b128, tile_b)
    b_pad = tile_b * n_tiles

    # Feature-major input: [state_dim, b_pad], batch on the lane axis.
    xt = jnp.pad(x, ((0, b_pad - B), (0, 0))).T.astype(jnp.bfloat16)

    kernel = functools.partial(_policy_kernel, action_dim=action_dim)

    out = pl.pallas_call(
        kernel,
        out_shape=jax.ShapeDtypeStruct((two_a, b_pad), jnp.float32),
        grid_spec=pltpu.PrefetchScalarGridSpec(
            num_scalar_prefetch=0,
            grid=(n_tiles,),
            in_specs=[
                pl.BlockSpec((state_dim, tile_b), lambda i: (0, i)),   # x^T tile
                pl.BlockSpec((hidden, state_dim), lambda i: (0, 0)),   # W1 (resident)
                pl.BlockSpec((hidden, 1),         lambda i: (0, 0)),   # b1
                pl.BlockSpec((two_a, hidden),     lambda i: (0, 0)),   # W_heads
                pl.BlockSpec((two_a, 1),          lambda i: (0, 0)),   # b_heads
            ],
            out_specs=pl.BlockSpec((two_a, tile_b), lambda i: (0, i)),  # packed mu|std ^T
        ),
        compiler_params=pltpu.CompilerParams(
            dimension_semantics=("parallel",)),
    )(xt, params["w1"], params["b1"], params["w_heads"], params["b_heads"])

    mu = out[:action_dim, :B].T
    std = out[action_dim:, :B].T
    return mu, std


def init_params(key, state_dim, hidden_dim, action_dim):
    """Mirror torch.nn.Linear's U(-1/sqrt(fan_in), 1/sqrt(fan_in)) init.
    Weights are stored in PyTorch [out, in] layout (natural for the transposed
    kernel) and in bf16 (MXU-native); biases are [out, 1] f32.  The two head
    weights/biases are concatenated along the output dim (mu rows then std rows)."""
    ks = jax.random.split(key, 6)

    def linear(kw, kb, fan_in, fan_out):
        bound = 1.0 / np.sqrt(fan_in)
        w = jax.random.uniform(kw, (fan_out, fan_in), jnp.float32, -bound, bound)
        b = jax.random.uniform(kb, (fan_out, 1), jnp.float32, -bound, bound)
        return w, b

    w1, b1 = linear(ks[0], ks[1], state_dim, hidden_dim)
    w_mu, b_mu = linear(ks[2], ks[3], hidden_dim, action_dim)
    w_std, b_std = linear(ks[4], ks[5], hidden_dim, action_dim)

    w_heads = jnp.concatenate([w_mu, w_std], axis=0)
    b_heads = jnp.concatenate([b_mu, b_std], axis=0)
    return {
        "w1": w1.astype(jnp.bfloat16), "b1": b1,
        "w_heads": w_heads.astype(jnp.bfloat16), "b_heads": b_heads,
    }


def reference_forward(x, p, action_dim):
    """Plain-JAX reference mirroring the kernel's numerics (bf16 matmul operands,
    f32 accumulation / bias / activations)."""
    xb = x.astype(jnp.bfloat16).astype(jnp.float32)
    w1 = p["w1"].astype(jnp.float32)
    h = jnp.maximum(xb @ w1.T + p["b1"][:, 0], 0.0)
    hb = h.astype(jnp.bfloat16).astype(jnp.float32)
    wh = p["w_heads"].astype(jnp.float32)
    heads = hb @ wh.T + p["b_heads"][:, 0]
    mu = (jnp.tanh(heads[:, :action_dim]) + 1.0) * np.pi
    std = jax.nn.softplus(heads[:, action_dim:]) + 0.001
    return mu, std


if __name__ == "__main__":
    key = jax.random.PRNGKey(0)
    k_param, k_x, k_x2 = jax.random.split(key, 3)

    state_dim, hidden_dim, action_dim = 4, 32, 2
    params = init_params(k_param, state_dim, hidden_dim, action_dim)

    # Small batch (single grid step, tail padding).
    x = jax.random.normal(k_x, (2, state_dim), jnp.float32)
    mu, std = policy_net_continuous(x, params, action_dim)
    jax.block_until_ready((mu, std))
    mu_ref, std_ref = reference_forward(x, params, action_dim)
    np.testing.assert_allclose(np.asarray(mu), np.asarray(mu_ref), rtol=1e-4, atol=1e-4)
    np.testing.assert_allclose(np.asarray(std), np.asarray(std_ref), rtol=1e-4, atol=1e-4)

    # Non-aligned batch (multi-step grid + balanced tiles + tail padding).
    x2 = jax.random.normal(k_x2, (300, state_dim), jnp.float32)
    mu2, std2 = policy_net_continuous(x2, params, action_dim)
    jax.block_until_ready((mu2, std2))
    mu2_ref, std2_ref = reference_forward(x2, params, action_dim)
    np.testing.assert_allclose(np.asarray(mu2), np.asarray(mu2_ref), rtol=1e-4, atol=1e-4)
    np.testing.assert_allclose(np.asarray(std2), np.asarray(std2_ref), rtol=1e-4, atol=1e-4)

    print("KERNEL_OK")
</pallas_src>

<mosaic_0001>
module attributes {stable_mosaic.version = 11 : i64} {
  func.func @_policy_kernel(%arg0: i32, %arg1: memref<4x128xbf16, #tpu.memory_space<vmem>>, %arg2: memref<32x4xbf16, #tpu.memory_space<vmem>>, %arg3: memref<32x1xf32, #tpu.memory_space<vmem>>, %arg4: memref<4x32xbf16, #tpu.memory_space<vmem>>, %arg5: memref<4x1xf32, #tpu.memory_space<vmem>>, %arg6: memref<4x128xf32, #tpu.memory_space<vmem>>) attributes {dimension_semantics = [#tpu.dimension_semantics<parallel>], iteration_bounds = array<i64: 1>, scalar_prefetch = 0 : i64, scratch_operands = 0 : i64, tpu.core_type = #tpu.core_type<tc>, window_params = [{transform_indices = @transform_0, window_bounds = array<i64: 4, 128>}, {pipeline_mode = #tpu.pipeline_mode<synchronous>, transform_indices = @transform_1, window_bounds = array<i64: 32, 4>}, {pipeline_mode = #tpu.pipeline_mode<synchronous>, transform_indices = @transform_2, window_bounds = array<i64: 32, 1>}, {pipeline_mode = #tpu.pipeline_mode<synchronous>, transform_indices = @transform_3, window_bounds = array<i64: 4, 32>}, {pipeline_mode = #tpu.pipeline_mode<synchronous>, transform_indices = @transform_4, window_bounds = array<i64: 4, 1>}, {transform_indices = @transform_5, window_bounds = array<i64: 4, 128>}]} {
    %c0 = arith.constant 0 : index
    %c0_0 = arith.constant 0 : index
    %0 = vector.load %arg2[%c0, %c0_0] : memref<32x4xbf16, #tpu.memory_space<vmem>>, vector<32x4xbf16>
    %c0_1 = arith.constant 0 : index
    %c0_2 = arith.constant 0 : index
    %1 = vector.load %arg1[%c0_1, %c0_2] : memref<4x128xbf16, #tpu.memory_space<vmem>>, vector<4x128xbf16>
    %cst = arith.constant dense<0.000000e+00> : vector<32x128xf32>
    %2 = tpu.matmul %0, %1, %cst {dimension_numbers = #tpu.dot_dimension_numbers<[1], [0], [0], [1], [0, 0, 1, 1], [], []>} : vector<32x4xbf16>, vector<4x128xbf16>, vector<32x128xf32> -> vector<32x128xf32>
    %c0_3 = arith.constant 0 : index
    %c0_4 = arith.constant 0 : index
    %3 = vector.load %arg3[%c0_3, %c0_4] : memref<32x1xf32, #tpu.memory_space<vmem>>, vector<32x1xf32>
    %4 = vector.broadcast %3 : vector<32x1xf32> to vector<32x128xf32>
    %5 = arith.addf %2, %4 : vector<32x128xf32>
    %cst_5 = arith.constant 0.000000e+00 : f32
    %6 = vector.broadcast %cst_5 : f32 to vector<32x128xf32>
    %7 = arith.maximumf %5, %6 : vector<32x128xf32>
    %c0_6 = arith.constant 0 : index
    %c0_7 = arith.constant 0 : index
    %8 = vector.load %arg4[%c0_6, %c0_7] : memref<4x32xbf16, #tpu.memory_space<vmem>>, vector<4x32xbf16>
    %9 = arith.truncf %7 : vector<32x128xf32> to vector<32x128xbf16>
    %cst_8 = arith.constant dense<0.000000e+00> : vector<4x128xf32>
    %10 = tpu.matmul %8, %9, %cst_8 {dimension_numbers = #tpu.dot_dimension_numbers<[1], [0], [0], [1], [0, 0, 1, 1], [], []>} : vector<4x32xbf16>, vector<32x128xbf16>, vector<4x128xf32> -> vector<4x128xf32>
    %c0_9 = arith.constant 0 : index
    %c0_10 = arith.constant 0 : index
    %11 = vector.load %arg5[%c0_9, %c0_10] : memref<4x1xf32, #tpu.memory_space<vmem>>, vector<4x1xf32>
    %12 = vector.broadcast %11 : vector<4x1xf32> to vector<4x128xf32>
    %13 = arith.addf %10, %12 : vector<4x128xf32>
    %14 = math.tanh %13 : vector<4x128xf32>
    %cst_11 = arith.constant 1.000000e+00 : f32
    %15 = vector.broadcast %cst_11 : f32 to vector<4x128xf32>
    %16 = arith.addf %14, %15 : vector<4x128xf32>
    %cst_12 = arith.constant 3.14159274 : f32
    %17 = vector.broadcast %cst_12 : f32 to vector<4x128xf32>
    %18 = arith.mulf %16, %17 : vector<4x128xf32>
    %cst_13 = arith.constant 0.000000e+00 : f32
    %19 = vector.broadcast %cst_13 : f32 to vector<4x128xf32>
    %20 = arith.maximumf %13, %19 : vector<4x128xf32>
    %21 = vector.broadcast %cst_13 : f32 to vector<4x128xf32>
    %22 = arith.subf %13, %21 : vector<4x128xf32>
    %23 = arith.cmpf one, %22, %22 : vector<4x128xf32>
    %24 = vector.broadcast %cst_13 : f32 to vector<4x128xf32>
    %25 = arith.addf %13, %24 : vector<4x128xf32>
    %26 = math.absf %22 : vector<4x128xf32>
    %cst_14 = arith.constant 0.000000e+00 : f32
    %27 = vector.broadcast %cst_14 : f32 to vector<4x128xf32>
    %28 = arith.subf %27, %26 : vector<4x128xf32>
    %29 = math.exp %28 : vector<4x128xf32>
    %30 = math.log1p %29 : vector<4x128xf32>
    %31 = arith.addf %20, %30 : vector<4x128xf32>
    %32 = arith.select %23, %25, %31 : vector<4x128xi1>, vector<4x128xf32>
    %cst_15 = arith.constant 1.000000e-03 : f32
    %33 = vector.broadcast %cst_15 : f32 to vector<4x128xf32>
    %34 = arith.addf %32, %33 : vector<4x128xf32>
    %35 = tpu.iota {dimensions = array<i32: 0>} : vector<4x128xi32>
    %c2_i32 = arith.constant 2 : i32
    %36 = vector.broadcast %c2_i32 : i32 to vector<4x128xi32>
    %37 = arith.cmpi slt, %35, %36 : vector<4x128xi32>
    %38 = arith.select %37, %18, %34 : vector<4x128xi1>, vector<4x128xf32>
    %c0_16 = arith.constant 0 : index
    %c0_17 = arith.constant 0 : index
    %39 = vector.load %arg6[%c0_16, %c0_17] : memref<4x128xf32, #tpu.memory_space<vmem>>, vector<4x128xf32>
    tpu.vector_store %arg6[%c0_16, %c0_17], %38 {strides = array<i32>} : memref<4x128xf32, #tpu.memory_space<vmem>>, vector<4x128xf32>,
    return
  }
  func.func @transform_0(%arg0: i32) -> (i32, i32) {
    %c0_i32 = arith.constant 0 : i32
    %c0_i32_0 = arith.constant 0 : i32
    return %c0_i32, %arg0 : i32, i32
  }
  func.func @transform_1(%arg0: i32) -> (i32, i32) {
    %c0_i32 = arith.constant 0 : i32
    %c0_i32_0 = arith.constant 0 : i32
    %c0_i32_1 = arith.constant 0 : i32
    return %c0_i32, %c0_i32_0 : i32, i32
  }
  func.func @transform_2(%arg0: i32) -> (i32, i32) {
    %c0_i32 = arith.constant 0 : i32
    %c0_i32_0 = arith.constant 0 : i32
    %c0_i32_1 = arith.constant 0 : i32
    return %c0_i32, %c0_i32_0 : i32, i32
  }
  func.func @transform_3(%arg0: i32) -> (i32, i32) {
    %c0_i32 = arith.constant 0 : i32
    %c0_i32_0 = arith.constant 0 : i32
    %c0_i32_1 = arith.constant 0 : i32
    return %c0_i32, %c0_i32_0 : i32, i32
  }
  func.func @transform_4(%arg0: i32) -> (i32, i32) {
    %c0_i32 = arith.constant 0 : i32
    %c0_i32_0 = arith.constant 0 : i32
    %c0_i32_1 = arith.constant 0 : i32
    return %c0_i32, %c0_i32_0 : i32, i32
  }
  func.func @transform_5(%arg0: i32) -> (i32, i32) {
    %c0_i32 = arith.constant 0 : i32
    %c0_i32_0 = arith.constant 0 : i32
    return %c0_i32, %arg0 : i32, i32
  }
}

</mosaic_0001>

<bundles_post_ra>
// kernel: tpu_custom_call.1
= control target key start
LH: loop header
LB: loop body
LE: loop exit
PB: predicated region body
PF: predicated region fallthrough
CT: control target
= control target key end

     0   :  { %vm68_vm0 = vcmask 1041408   ;;  %vm61_vm1 = vcmask 31744   ;;  %s277_s0 = inlined_call_operand.vmem [shape: bf16[4,128], index: 0, kind: input, shape index: {}]   ;;  %s278_s1 = inlined_call_operand.vmem [shape: bf16[32,4], index: 1, kind: input, shape index: {}]   ;;  %s279_s2 = inlined_call_operand.vmem [shape: f32[32,1], index: 2, kind: input, shape index: {}]   ;;  %s280_s3 = inlined_call_operand.vmem [shape: bf16[4,32], index: 3, kind: input, shape index: {}]   ;;  %s281_s4 = inlined_call_operand.vmem [shape: f32[4,1], index: 4, kind: input, shape index: {}]   ;;  %s282_s5 = inlined_call_operand.hbm [shape: f32[4,128], index: 5, kind: output, shape index: {}]  }
   0x1   :  { %v26_v0 = vld [vmem:[%s277_s0] sm:$0x3]  ;;  %v176_v1 = vld [vmem:[%s278_s1 + $0x8] sm:$0xff]  ;;  %v29_v4 = vld [vmem:[%s279_s2 + $0x10] sm:$0xff] }
   0x2   :  { %v70_v2 = vsel %vm68_vm0, %v26_v0, 0  ;;  %v175_v3 = vld [vmem:[%s278_s1] sm:$0xff] }
   0x3   :  { %v27_v5 = vld [vmem:[%s279_s2] sm:$0xff]  ;;  %177 = vmatpush.bf16.msra.mxu2 %v70_v2  ;;  %79 = vmatpush.bf16.msra.mxu0 %v70_v2 }
   0x4   :  { %10 = vsyncpa [#allocation3], 0  ;;  %v215_v6 = vmov 0   ;;  %v30_v7 = vld [vmem:[%s279_s2 + $0x18] sm:$0xff]  ;;  %v28_v8 = vld [vmem:[%s279_s2 + $0x8] sm:$0xff]  ;;  %vm104_vm2 = vcmask 261120   ;;  %v143_v41 = vlaneseq }
   0x5   :  { %180 = vset.pattern.permute.xlu0 %v215_v6  ;;  %181 = vset.pattern.permute.xlu1 %v215_v6  ;;  %v98_v9 = vld [vmem:[%s281_s4] sm:$0xf]  ;;  %s155_s10 = sshll.u32 %s282_s5, 4  ;;  %s156_s10 = int_to_ptr.hbm [resolvable:$true] %s155_s10 }
   0x6   :  { %43 = vperm.xlu0 %180, %v29_v4   ;;  %33 = vperm.xlu1 %181, %v27_v5   ;;  %v95_v28 = vld [vmem:[%s280_s3] sm:$0x3]  ;;  %v144_v47 = vshrl.u32 %v143_v41, 7  ;;  %s216_s3 = smov [#allocation2]  }
   0x7   :  { %173 = vmatmul.msk.bf16.vlgmr.msra.gmra.mxu2 %vm61_vm1, %v176_v1  ;;  %172 = vmatmul.msk.bf16.vlgmr.msra.gmra.mxu0 %vm61_vm1, %v175_v3  ;;  %s153_s7 = sshll.u32 %s216_s3, 4  ;;  %s154_s7 = int_to_ptr.vmem [resolvable:$true] %s153_s7 }
   0x8   :  { %182 = vset.pattern.permute.xlu2 %v215_v6  ;;  %vm145_vm5 = vcmp.lt.s32.totalorder %v144_v47, 2 }
   0x9   :  { %101 = vperm.xlu2 %182, %v98_v9  }
   0xe   :  { %48 = vperm.xlu0 %180, %v30_v7   ;;  %38 = vperm.xlu1 %181, %v28_v8  }
  0x63   :  { %v102_v29 = vpop.permute.xlu2 %101 }
  0x78   :  { %v34_v10 = vpop.permute.xlu1 %33  ;;  %v44_v12 = vpop.permute.xlu0 %43 }
  0x80   :  { %v39_v14 = vpop.permute.xlu1 %38  ;;  %v49_v17 = vpop.permute.xlu0 %48 }
  0x84   :  { %v81_v11 = vpop.f32.mrf.mxu0 }
  0x85   :  { %v82_v19 = vadd.f32 %v81_v11, %v34_v10 }
  0x87   :  { %v91_v24 = vmax.f32 %v82_v19, 0.0 }
  0x8a   :  { %v86_v13 = vpop.f32.mrf.mxu2 }
  0x8b   :  { %v87_v16 = vadd.f32 %v86_v13, %v44_v12 }
  0x8c   :  { %v83_v15 = vpop.f32.mrf.mxu0 }
  0x8d   :  { %v84_v20 = vadd.f32 %v83_v15, %v39_v14  ;;  %v93_v22 = vmax.f32 %v87_v16, 0.0 }
  0x8f   :  { %v92_v25 = vmax.f32 %v84_v20, 0.0 }
  0x91   :  { %v96_v27 = vpack.c.bf16 %v92_v25, %v91_v24 }
  0x92   :  { %v88_v18 = vpop.f32.mrf.mxu2 }
  0x93   :  { %v89_v21 = vadd.f32 %v88_v18, %v49_v17 }
  0x95   :  { %v94_v23 = vmax.f32 %v89_v21, 0.0 }
  0x97   :  { %v97_v26 = vpack.c.bf16 %v94_v23, %v93_v22 }
  0x99   :  { %114 = vmatpush.bf16.msra.mxu1 %v97_v26 }
  0x9d   :  { %115 = vmatpush.bf16.msra.mxu1 %v96_v27 }
  0xa0   :  { %174 = vmatmul.msk.bf16.vlgmr.msra.gmra.mxu1 %vm104_vm2, %v95_v28 }
 0x11d   :  { %v117_v30 = vpop.f32.mrf.mxu1 }
 0x11e   :  { %v118_v31 = vadd.f32 %v117_v30, %v102_v29 }
 0x120   :  { %v127_v32 = vand.u32 2147483647, %v118_v31  ;;  %v124_v46 = vmax.f32 %v118_v31, 0.0  ;;  %vm125_vm4 = vcmp.ne.f32.partialorder %v118_v31, %v118_v31 }
 0x122   :  { %v128_v33 = vsub.f32 0.0, %v127_v32 }
 0x124   :  { %v129_v34 = vmul.f32 1.442695, %v128_v33 }
 0x125   :  { %v119_v35 = vpop.f32.mrf.mxu1 }
 0x126   :  { %183 = vpow2.f32 %v129_v34 }
 0x127   :  { %185 = vtanh.f32 %v118_v31 }
 0x12c   :  { %v184_v36 = vpop.eup %183 }
 0x12d   :  { %v131_v37 = vadd.f32 1.0, %v184_v36  ;;  %v134_v38 = vmul.f32 -0.5, %v184_v36  ;;  %v137_v40 = vand.u32 2147483647, %v184_v36  ;;  %v186_v42 = vpop.eup %185 }
 0x12e   :  { %v122_v48 = vadd.f32 1.0, %v186_v42 }
 0x12f   :  { %187 = vlog2.f32 %v131_v37  ;;  %v135_v39 = vadd.f32 1.0, %v134_v38  ;;  %vm138_vm3 = vcmp.lt.f32.partialorder %v137_v40, 0.0004427343 }
 0x130   :  { %v123_v52 = vmul.f32 3.1415927, %v122_v48 }
 0x131   :  { %v136_v45 = vmul.f32 %v184_v36, %v135_v39 }
 0x135   :  { %v188_v43 = vpop.eup %187 }
 0x136   :  { %v133_v44 = vmul.f32 0.6931472, %v188_v43 }
 0x138   :  { %v139_v49 = vsel %vm138_vm3, %v136_v45, %v133_v44 }
 0x139   :  { %v140_v50 = vadd.f32 %v139_v49, %v124_v46 }
 0x13b   :  { %v141_v51 = vsel %vm125_vm4, %v118_v31, %v140_v50 }
 0x13c   :  { %v142_v53 = vadd.f32 0.001, %v141_v51 }
 0x13e   :  { %v146_v54 = vsel %vm145_vm5, %v123_v52, %v142_v53 }
 0x13f   :  { %147 = vst [vmem:[#allocation2] sm:$0xf] %v146_v54 }
 0x140   :  { %158 = dma.vmem_to_hbm [thread:$0]  %s154_s7, 64, %s156_s10, [#allocation3]  }
 0x141   :  { %213 = dma.done.wait [#allocation3], 64  }
 0x142   :  { %214 = vsyncadd [#allocation3], 4294967232 }
 0x143   :  { %163 = vsyncpa [#allocation3], 1 }

</bundles_post_ra>
